<compile_context>
chip_gen: v5e
topology: v5e:2x2
jax: 0.10.0
libtpu: 0.0.40
codegen_flags: <defaults>
</compile_context>

<pallas_src>
import jax
import jax.numpy as jnp
import numpy as np
from jax.experimental import pallas as pl
from jax.experimental.pallas import tpu as pltpu


def _upsample_kernel(x_ref, r_ref, o_ref):
    # x_ref: (TM, W), r_ref: (W, 4W) 0/1 replication matrix, o_ref: (TM, 4W)
    o_ref[...] = jnp.dot(
        x_ref[...], r_ref[...], preferred_element_type=jnp.float32
    ).astype(o_ref.dtype)


def _pick_tile_m(M, W, itemsize):
    """Largest M-tile that (a) divides M, (b) keeps each output block <= ~4 MiB
    (VMEM headroom with double-buffering, incl. v7x's 64 MiB), and (c) leaves
    >= 2 grid steps when possible so the parallel axis can use both v7x TCs."""
    max_tm_by_vmem = max(8, (4 * 1024 * 1024) // max(1, 4 * W * itemsize))
    candidates = [t for t in (1024, 512, 256, 128, 64, 32, 16, 8)
                  if t <= max_tm_by_vmem]
    for tm in candidates:                       # prefer >= 2 grid steps
        if M % tm == 0 and M // tm >= 2:
            return tm
    for tm in candidates:                       # else largest exact divisor
        if M % tm == 0:
            return tm
    return M                                    # single full block fallback


def wrap_function_forward(feat, scale_factor=2):
    """Pallas TPU implementation of F.interpolate(feat, scale_factor=2, mode='nearest')."""
    assert scale_factor == 2, "kernel built for scale_factor=2"
    N, C, H, W = feat.shape
    OH, OW = H * scale_factor, W * scale_factor
    M = N * C * H
    itemsize = np.dtype(feat.dtype).itemsize

    # Flatten N, C, H into one big matmul M dimension (contiguous, free).
    x2d = feat.reshape(M, W)

    # 0/1 replication matrix: column j = r*OW + 2*w + s  copies input column w.
    # Multiplying by it performs the column interleave AND lays out the two
    # duplicated output rows back-to-back, so the wrapper reshape is free.
    cols = np.arange(2 * OW)
    src = (cols % OW) // 2                                   # source input column
    R2 = jnp.asarray((np.arange(W)[:, None] == src[None, :]).astype(feat.dtype))  # (W, 4W)

    tm = _pick_tile_m(M, W, itemsize)
    grid = (M // tm,)

    cost = pl.CostEstimate(
        flops=2 * M * W * (2 * OW),              # tiny replication matmul
        transcendentals=0,
        bytes_accessed=(M * W + M * 2 * OW + W * 2 * OW) * itemsize,  # ~5x input
    )

    out2d = pl.pallas_call(
        _upsample_kernel,
        out_shape=jax.ShapeDtypeStruct((M, 2 * OW), feat.dtype),
        grid_spec=pltpu.PrefetchScalarGridSpec(
            num_scalar_prefetch=0,
            grid=grid,
            in_specs=[
                pl.BlockSpec((tm, W), lambda i: (i, 0)),
                pl.BlockSpec((W, 2 * OW), lambda i: (0, 0)),   # resident constant
            ],
            out_specs=pl.BlockSpec((tm, 2 * OW), lambda i: (i, 0)),
        ),
        compiler_params=pltpu.CompilerParams(
            dimension_semantics=("parallel",)),
        cost_estimate=cost,
    )(x2d, R2)

    # (M, 4W) == (N, C, H, 2, 2W) in memory  ->  (N, C, 2H, 2W): free reshape.
    return out2d.reshape(N, C, OH, OW)


if __name__ == "__main__":
    key = jax.random.PRNGKey(0)
    # Small NCHW input consistent with the wrapped interpolate test.
    x = jax.random.normal(key, (2, 4, 16, 16), dtype=jnp.float32)

    y = wrap_function_forward(x, scale_factor=2)
    y = jax.block_until_ready(y)

    # Reference: nearest-neighbour upsample (matches torch F.interpolate mode='nearest').
    ref = np.repeat(np.repeat(np.asarray(x), 2, axis=2), 2, axis=3)
    np.testing.assert_allclose(np.asarray(y), ref, rtol=0, atol=0)

    print("KERNEL_OK")
</pallas_src>

<mosaic_0001>
module attributes {stable_mosaic.version = 11 : i64} {
  func.func @_upsample_kernel(%arg0: i32, %arg1: memref<64x16xf32, #tpu.memory_space<vmem>>, %arg2: memref<16x64xf32, #tpu.memory_space<vmem>>, %arg3: memref<64x64xf32, #tpu.memory_space<vmem>>) attributes {dimension_semantics = [#tpu.dimension_semantics<parallel>], iteration_bounds = array<i64: 2>, scalar_prefetch = 0 : i64, scratch_operands = 0 : i64, tpu.core_type = #tpu.core_type<tc>, window_params = [{transform_indices = @transform_0, window_bounds = array<i64: 64, 16>}, {pipeline_mode = #tpu.pipeline_mode<synchronous>, transform_indices = @transform_1, window_bounds = array<i64: 16, 64>}, {transform_indices = @transform_2, window_bounds = array<i64: 64, 64>}]} {
    %c0 = arith.constant 0 : index
    %c0_0 = arith.constant 0 : index
    %0 = vector.load %arg1[%c0, %c0_0] : memref<64x16xf32, #tpu.memory_space<vmem>>, vector<64x16xf32>
    %c0_1 = arith.constant 0 : index
    %c0_2 = arith.constant 0 : index
    %1 = vector.load %arg2[%c0_1, %c0_2] : memref<16x64xf32, #tpu.memory_space<vmem>>, vector<16x64xf32>
    %cst = arith.constant dense<0.000000e+00> : vector<64x64xf32>
    %2 = tpu.matmul %0, %1, %cst {dimension_numbers = #tpu.dot_dimension_numbers<[1], [0], [0], [1], [0, 0, 1, 1], [], []>} : vector<64x16xf32>, vector<16x64xf32>, vector<64x64xf32> -> vector<64x64xf32>
    %c0_3 = arith.constant 0 : index
    %c0_4 = arith.constant 0 : index
    %3 = vector.load %arg3[%c0_3, %c0_4] : memref<64x64xf32, #tpu.memory_space<vmem>>, vector<64x64xf32>
    tpu.vector_store %arg3[%c0_3, %c0_4], %2 {strides = array<i32>} : memref<64x64xf32, #tpu.memory_space<vmem>>, vector<64x64xf32>,
    return
  }
  func.func @transform_0(%arg0: i32) -> (i32, i32) {
    %c0_i32 = arith.constant 0 : i32
    %c0_i32_0 = arith.constant 0 : i32
    return %arg0, %c0_i32 : i32, i32
  }
  func.func @transform_1(%arg0: i32) -> (i32, i32) {
    %c0_i32 = arith.constant 0 : i32
    %c0_i32_0 = arith.constant 0 : i32
    %c0_i32_1 = arith.constant 0 : i32
    return %c0_i32, %c0_i32_0 : i32, i32
  }
  func.func @transform_2(%arg0: i32) -> (i32, i32) {
    %c0_i32 = arith.constant 0 : i32
    %c0_i32_0 = arith.constant 0 : i32
    return %arg0, %c0_i32 : i32, i32
  }
}

</mosaic_0001>

<bundles_post_ra>
// kernel: tpu_custom_call.1
= control target key start
LH: loop header
LB: loop body
LE: loop exit
PB: predicated region body
PF: predicated region fallthrough
CT: control target
= control target key end

     0   :  { %s344_s9 = smov 0   ;;  %s383_s0 = inlined_call_operand.vmem [shape: f32[128,16], index: 0, kind: input, shape index: {}]   ;;  %s384_s1 = inlined_call_operand.vmem [shape: f32[16,64], index: 1, kind: input, shape index: {}]   ;;  %s385_s2 = inlined_call_operand.vmem [shape: f32[128,64], index: 2, kind: output, shape index: {}]  }
   0x1 LB: > { %s288_s10 = sadd.s32 4294967295, %s327_s9   ;;  %p292_p0 = scmp.ge.s32.totalorder %s327_s9, 1  ;;  %s327_s9 = sphi %s344_s9, %s12_s9  }
   0x2   : > { %p113_p1 = scmp.lt.s32.totalorder %s327_s9, 3 }
   0x4   : > { %p114_p2 = pnand %p292_p0, %p113_p1 }
   0x5   : > { %s293_s15 = sshll.u32 (!%p114_p2), %s288_s10, 3 }
   0x6   : > { %117 = sbr.rel (%p114_p2) target bundleno = 158 (0x9e), region = 28  ;;  %p136_p3 = scmp.lt.s32.totalorder (!%p114_p2), %s293_s15, 15 }
   0xb   : > { %v156_v0 = vld [vmem:[%s384_s1 + $0x8] sm:$0xff]  ;;  %v155_v1 = vld [vmem:[%s384_s1] sm:$0xff]  ;;  %s387_s15 = smov (!%p136_p3, %s293_s15), 15  ;;  %vm157_vm0 = vcmask 130048   ;;  %vm223_vm1 = vcmask 523264  }
   0xc   : > { %308 = vmatpush.msra.mxu2 %v156_v0  ;;  %309 = vmatpush.msra.mxu3 %v156_v0  ;;  %s294_s16 = sshll.u32 %s387_s15, 3 }
   0xd   : > { %196 = vmatpush.msra.mxu0 %v156_v0  ;;  %307 = vmatpush.msra.mxu1 %v156_v0  ;;  %s139_s19 = scalar_lea.vmem %s383_s0, %s294_s16  ;;  %s145_s22 = scalar_lea.vmem %s385_s2, %s294_s16 }
   0xe   : > { %311 = vmatpush.msra.mxu2 %v155_v1  ;;  %312 = vmatpush.msra.mxu3 %v155_v1  ;;  %v151_v2 = vld [vmem:[%s139_s19 + $0x20] sm:$0xff]  ;;  %v153_v3 = vld [vmem:[%s139_s19 + $0x30] sm:$0xff]  ;;  %v152_v6 = vld [vmem:[%s139_s19 + $0x28] sm:$0xff] }
   0xf   : > { %197 = vmatpush.msra.mxu0 %v155_v1  ;;  %310 = vmatpush.msra.mxu1 %v155_v1  ;;  %v147_v4 = vld [vmem:[%s139_s19] sm:$0xff]  ;;  %v149_v5 = vld [vmem:[%s139_s19 + $0x10] sm:$0xff]  ;;  %v154_v7 = vld [vmem:[%s139_s19 + $0x38] sm:$0xff] }
  0x10   : > { %301 = vmatmul.msk.f32.vlgmr.msra.gmra.mxu2 %vm157_vm0, %v151_v2  ;;  %303 = vmatmul.msk.f32.vlgmr.msra.gmra.mxu3 %vm157_vm0, %v153_v3  ;;  %v148_v8 = vld [vmem:[%s139_s19 + $0x8] sm:$0xff]  ;;  %v150_v9 = vld [vmem:[%s139_s19 + $0x18] sm:$0xff] }
  0x11   : > { %297 = vmatmul.msk.f32.vlgmr.msra.gmra.mxu0 %vm157_vm0, %v147_v4  ;;  %299 = vmatmul.msk.f32.vlgmr.msra.gmra.mxu1 %vm157_vm0, %v149_v5 }
  0x18   : > { %302 = vmatmul.msk.f32.gmra.mxu2 %vm157_vm0, %v152_v6  ;;  %304 = vmatmul.msk.f32.gmra.mxu3 %vm157_vm0, %v154_v7 }
  0x19   : > { %298 = vmatmul.msk.f32.gmra.mxu0 %vm157_vm0, %v148_v8  ;;  %300 = vmatmul.msk.f32.gmra.mxu1 %vm157_vm0, %v150_v9 }
  0x8e   : > { %v199_v10 = vpop.f32.mrf.mxu0  ;;  %v205_v11 = vpop.f32.mrf.mxu1 }
  0x8f   : > { %224 = vst.msk [vmem:[%s145_s22] sm:$0xff] %vm223_vm1, %v199_v10 }
  0x90   : > { %226 = vst.msk [vmem:[%s145_s22 + $0x10] sm:$0xff] %vm223_vm1, %v205_v11 }
  0x93   : > { %v211_v12 = vpop.f32.mrf.mxu2  ;;  %v217_v13 = vpop.f32.mrf.mxu3 }
  0x94   : > { %228 = vst.msk [vmem:[%s145_s22 + $0x20] sm:$0xff] %vm223_vm1, %v211_v12 }
  0x95   : > { %230 = vst.msk [vmem:[%s145_s22 + $0x30] sm:$0xff] %vm223_vm1, %v217_v13 }
  0x96   : > { %v202_v14 = vpop.f32.mrf.mxu0  ;;  %v208_v15 = vpop.f32.mrf.mxu1 }
  0x97   : > { %225 = vst.msk [vmem:[%s145_s22 + $0x8] sm:$0xff] %vm223_vm1, %v202_v14 }
  0x98   : > { %227 = vst.msk [vmem:[%s145_s22 + $0x18] sm:$0xff] %vm223_vm1, %v208_v15 }
  0x9b   : > { %v214_v16 = vpop.f32.mrf.mxu2  ;;  %v220_v17 = vpop.f32.mrf.mxu3 }
  0x9c   : > { %229 = vst.msk [vmem:[%s145_s22 + $0x28] sm:$0xff] %vm223_vm1, %v214_v16 }
  0x9d   : > { %231 = vst.msk [vmem:[%s145_s22 + $0x38] sm:$0xff] %vm223_vm1, %v220_v17 }
  0x9e PF: > { %s12_s9 = sadd.s32 1, %s327_s9  }
  0x9f   : > { %p9_p4 = scmp.ge.s32.totalorder %s12_s9, 4  }
  0xa1   :  { %11 = sbr.rel (!%p9_p4) target bundleno = 1 (0x1), region = 58 }

</bundles_post_ra>
